<compile_context>
chip_gen: v5e
topology: v5e:2x2
jax: 0.10.0
libtpu: 0.0.40
codegen_flags: <defaults>
</compile_context>

<pallas_src>
import functools

import jax
import jax.numpy as jnp
from jax.experimental import pallas as pl
from jax.experimental.pallas import tpu as pltpu

_VMEM_LIMIT = 48 * 1024 * 1024          # explicit scoped-VMEM budget (fits v7x)
_FUSED_VMEM_BUDGET = 36 * 1024 * 1024   # conservative gate for the fused path
_MAX_BLOCK_BYTES = 4 * 1024 * 1024      # per-block cap for the two-pass path
_EPS = 1e-6


# --------------------------------------------------------------------------
# Fused single-pass kernel: reduce -> normalize -> apply in one grid step.
# --------------------------------------------------------------------------
def _grn_fused_kernel(x_ref, gamma_ref, beta_ref, o_ref, *, channels, reps,
                      inv_lane):
    """x_ref: (nb, rows, lane); gamma/beta: (1, 1, lane) f32 (lane-tiled)."""
    x = x_ref[...].astype(jnp.float32)                     # (nb, rows, lane)
    ssq = jnp.sum(x * x, axis=1, keepdims=True)            # (nb, 1, lane)
    # Fold lanes of the same channel (lane l holds channel l % C): after the
    # roll-fold every lane carries its channel's total sum of squares.
    folded = ssq
    for k in range(1, reps):
        folded = folded + pltpu.roll(ssq, shift=k * channels, axis=2)
    gx = jnp.sqrt(folded)                                   # (nb, 1, lane)
    # Each channel value is repeated `reps` times -> lane mean == channel mean.
    mean = jnp.sum(gx, axis=2, keepdims=True) * inv_lane    # (nb, 1, 1)
    nx = gx / (mean + _EPS)
    scale = gamma_ref[...] * nx + 1.0                        # gamma*Nx + 1
    o_ref[...] = (x * scale + beta_ref[...]).astype(o_ref.dtype)


# --------------------------------------------------------------------------
# Two-pass fallback kernels (large images).
# --------------------------------------------------------------------------
def _sumsq_kernel(x_ref, out_ref):
    """Accumulate sum(x^2) over the row (sublane) axis of each spatial tile."""
    @pl.when(pl.program_id(1) == 0)
    def _init():
        out_ref[...] = jnp.zeros_like(out_ref)

    x = x_ref[0].astype(jnp.float32)                         # (rt, lane)
    out_ref[...] += jnp.sum(x * x, axis=0, keepdims=True)[None]


def _apply_kernel(x_ref, scale_ref, beta_ref, o_ref):
    """y = x * scale + beta   (scale already folds gamma*Nx + 1, f32 math)."""
    xf = x_ref[...].astype(jnp.float32)
    o_ref[...] = (xf * scale_ref[...] + beta_ref[...]).astype(o_ref.dtype)


def _row_tile(rows, lane, itemsize, max_block_bytes=_MAX_BLOCK_BYTES):
    """Largest row tile that divides `rows`, is a multiple of 8 (or == rows),
    and keeps one block under the byte budget."""
    if rows * lane * itemsize <= max_block_bytes:
        return rows
    cap = max(8, (max_block_bytes // (lane * itemsize)) // 8 * 8)
    rt = cap
    while rt >= 8:
        if rows % rt == 0:
            return rt
        rt -= 8
    return rows  # fallback: single full-extent block (always legal)


def _fused_vmem_bytes(nb, rows, lane, itemsize):
    img = rows * lane
    # 2x double-buffered input + 2x double-buffered output + ~2 f32 temps.
    return nb * (4 * img * itemsize + 2 * img * 4)


# --------------------------------------------------------------------------
# Wrapper
# --------------------------------------------------------------------------
def grn_pallas(x, gamma, beta, *, force_two_pass=False):
    """x: (N, H, W, C); gamma, beta: (C,) or (1,1,1,C). Returns (N, H, W, C)."""
    N, H, W, C = x.shape
    HW = H * W
    itemsize = jnp.dtype(x.dtype).itemsize
    gamma = gamma.reshape(-1)
    beta = beta.reshape(-1)

    # Lane-dense re-view when the channel pattern repeats cleanly per 128 lanes.
    packed = (C < 128) and (128 % C == 0) and ((HW * C) % 128 == 0)
    if packed:
        lane = 128
        rows = (HW * C) // 128
        reps = 128 // C
    else:
        lane = C
        rows = HW
        reps = 1
    xv = x.reshape(N, rows, lane)   # metadata-only reshape (row-major)

    gamma_f = gamma.astype(jnp.float32)
    beta_f = beta.astype(jnp.float32)
    if packed:
        gamma_l = jnp.tile(gamma_f, reps).reshape(1, 1, lane)
        beta_l = jnp.tile(beta_f, reps).reshape(1, 1, lane)
    else:
        gamma_l = gamma_f.reshape(1, 1, lane)
        beta_l = beta_f.reshape(1, 1, lane)

    # ---------------- Fused single-pass path (preferred) --------------------
    use_fused = (not force_two_pass) and (
        _fused_vmem_bytes(1, rows, lane, itemsize) <= _FUSED_VMEM_BUDGET)
    if use_fused:
        # Pack several images per grid step (keep >= 2 grid steps when N > 1
        # so the DMA pipeline has something to overlap).
        max_nb = N if N == 1 else max(1, N // 2)
        nb = 1
        for cand in range(min(max_nb, N), 0, -1):
            if N % cand == 0 and (
                    _fused_vmem_bytes(cand, rows, lane, itemsize)
                    <= _FUSED_VMEM_BUDGET):
                nb = cand
                break

        kernel = functools.partial(
            _grn_fused_kernel, channels=C if packed else lane,
            reps=reps, inv_lane=1.0 / lane)
        y = pl.pallas_call(
            kernel,
            out_shape=jax.ShapeDtypeStruct((N, rows, lane), x.dtype),
            grid_spec=pltpu.PrefetchScalarGridSpec(
                num_scalar_prefetch=0,
                grid=(N // nb,),
                in_specs=[
                    pl.BlockSpec((nb, rows, lane), lambda i: (i, 0, 0)),
                    pl.BlockSpec((1, 1, lane), lambda i: (0, 0, 0)),
                    pl.BlockSpec((1, 1, lane), lambda i: (0, 0, 0)),
                ],
                out_specs=pl.BlockSpec((nb, rows, lane), lambda i: (i, 0, 0)),
            ),
            compiler_params=pltpu.CompilerParams(
                dimension_semantics=("parallel",),
                vmem_limit_bytes=_VMEM_LIMIT),
            cost_estimate=pl.CostEstimate(
                flops=4 * N * HW * C,
                transcendentals=N * C,
                bytes_accessed=2 * N * HW * C * itemsize),
        )(xv, gamma_l, beta_l)
        return y.reshape(N, H, W, C)

    # ---------------- Pass 1: tiled sum-of-squares reduction ----------------
    rt_r = _row_tile(rows, lane, itemsize)
    sumsq = pl.pallas_call(
        _sumsq_kernel,
        out_shape=jax.ShapeDtypeStruct((N, 1, lane), jnp.float32),
        grid_spec=pltpu.PrefetchScalarGridSpec(
            num_scalar_prefetch=0,
            grid=(N, rows // rt_r),
            in_specs=[pl.BlockSpec((1, rt_r, lane), lambda n, t: (n, t, 0))],
            out_specs=pl.BlockSpec((1, 1, lane), lambda n, t: (n, 0, 0)),
        ),
        compiler_params=pltpu.CompilerParams(
            dimension_semantics=("parallel", "arbitrary"),
            vmem_limit_bytes=_VMEM_LIMIT),
        cost_estimate=pl.CostEstimate(
            flops=2 * N * HW * C,
            transcendentals=0,
            bytes_accessed=N * HW * C * itemsize + N * lane * 4),
    )(xv)

    # ------------- Tiny O(N*C) per-image scalar math (plain JAX) ------------
    if packed:
        gxsq = sumsq.reshape(N, reps, C).sum(axis=1)                  # (N, C)
    else:
        gxsq = sumsq.reshape(N, C)
    gx = jnp.sqrt(gxsq)                                               # (N, C)
    nx = gx / (jnp.mean(gx, axis=-1, keepdims=True) + _EPS)           # (N, C)
    scale = gamma_f[None, :] * nx + 1.0                               # gamma*Nx + 1
    if packed:
        scale_l = jnp.tile(scale, (1, reps)).reshape(N, 1, lane)
    else:
        scale_l = scale.reshape(N, 1, lane)

    # -------------- Pass 2: fully parallel elementwise apply ----------------
    rt_a = _row_tile(rows, lane, itemsize)
    y = pl.pallas_call(
        _apply_kernel,
        out_shape=jax.ShapeDtypeStruct((N, rows, lane), x.dtype),
        grid_spec=pltpu.PrefetchScalarGridSpec(
            num_scalar_prefetch=0,
            grid=(N, rows // rt_a),
            in_specs=[
                pl.BlockSpec((1, rt_a, lane), lambda n, t: (n, t, 0)),
                pl.BlockSpec((1, 1, lane), lambda n, t: (n, 0, 0)),
                pl.BlockSpec((1, 1, lane), lambda n, t: (0, 0, 0)),
            ],
            out_specs=pl.BlockSpec((1, rt_a, lane), lambda n, t: (n, t, 0)),
        ),
        compiler_params=pltpu.CompilerParams(
            dimension_semantics=("parallel", "parallel"),
            vmem_limit_bytes=_VMEM_LIMIT),
        cost_estimate=pl.CostEstimate(
            flops=2 * N * HW * C,
            transcendentals=0,
            bytes_accessed=2 * N * HW * C * itemsize),
    )(xv, scale_l, beta_l)

    return y.reshape(N, H, W, C)


def grn_reference(x, gamma, beta):
    """Pure-JAX reference mirroring the PyTorch forward."""
    xf = x.astype(jnp.float32)
    gx = jnp.sqrt(jnp.sum(xf * xf, axis=(1, 2), keepdims=True))    # (N,1,1,C)
    nx = gx / (jnp.mean(gx, axis=-1, keepdims=True) + _EPS)        # (N,1,1,C)
    g = gamma.reshape(1, 1, 1, -1)
    b = beta.reshape(1, 1, 1, -1)
    return (g * (xf * nx) + b + xf).astype(x.dtype)


if __name__ == "__main__":
    key = jax.random.PRNGKey(0)
    kx, kg, kb = jax.random.split(key, 3)

    # 1) Lane-packed fused path (C=32 divides 128).
    N, H, W, C = 2, 16, 16, 32
    x = jax.random.normal(kx, (N, H, W, C), dtype=jnp.float32)
    # nn.Parameter zeros would make the GRN term vanish; use nonzero values.
    gamma = 0.1 * jax.random.normal(kg, (C,), dtype=jnp.float32)
    beta = 0.1 * jax.random.normal(kb, (C,), dtype=jnp.float32)
    out = jax.block_until_ready(grn_pallas(x, gamma, beta))
    ref = grn_reference(x, gamma, beta)
    assert out.shape == (N, H, W, C)
    assert jnp.allclose(out, ref, atol=1e-5, rtol=1e-5), "mismatch (fused packed)"

    # 2) General (non-packed) fused path with ragged rows / small lanes.
    N2, H2, W2, C2 = 1, 7, 7, 48
    x2 = jax.random.normal(kx, (N2, H2, W2, C2), dtype=jnp.float32)
    g2 = 0.1 * jax.random.normal(kg, (C2,), dtype=jnp.float32)
    b2 = 0.1 * jax.random.normal(kb, (C2,), dtype=jnp.float32)
    out2 = jax.block_until_ready(grn_pallas(x2, g2, b2))
    ref2 = grn_reference(x2, g2, b2)
    assert jnp.allclose(out2, ref2, atol=1e-5, rtol=1e-5), "mismatch (fused general)"

    # 3) Two-pass fallback (forced) — exercises the large-image path.
    out3 = jax.block_until_ready(grn_pallas(x, gamma, beta, force_two_pass=True))
    assert jnp.allclose(out3, ref, atol=1e-5, rtol=1e-5), "mismatch (two-pass)"

    print("KERNEL_OK")
</pallas_src>

<mosaic_0001>
module attributes {stable_mosaic.version = 11 : i64} {
  func.func @_grn_fused_kernel(%arg0: i32, %arg1: memref<1x64x128xf32, #tpu.memory_space<vmem>>, %arg2: memref<1x1x128xf32, #tpu.memory_space<vmem>>, %arg3: memref<1x1x128xf32, #tpu.memory_space<vmem>>, %arg4: memref<1x64x128xf32, #tpu.memory_space<vmem>>) attributes {dimension_semantics = [#tpu.dimension_semantics<parallel>], iteration_bounds = array<i64: 2>, scalar_prefetch = 0 : i64, scratch_operands = 0 : i64, tpu.core_type = #tpu.core_type<tc>, window_params = [{transform_indices = @transform_0, window_bounds = array<i64: 1, 64, 128>}, {pipeline_mode = #tpu.pipeline_mode<synchronous>, transform_indices = @transform_1, window_bounds = array<i64: 1, 1, 128>}, {pipeline_mode = #tpu.pipeline_mode<synchronous>, transform_indices = @transform_2, window_bounds = array<i64: 1, 1, 128>}, {transform_indices = @transform_3, window_bounds = array<i64: 1, 64, 128>}]} {
    %c0 = arith.constant 0 : index
    %c0_0 = arith.constant 0 : index
    %c0_1 = arith.constant 0 : index
    %0 = vector.load %arg1[%c0, %c0_0, %c0_1] : memref<1x64x128xf32, #tpu.memory_space<vmem>>, vector<1x64x128xf32>
    %1 = arith.mulf %0, %0 : vector<1x64x128xf32>
    %cst = arith.constant dense<0.000000e+00> : vector<1x128xf32>
    %2 = vector.multi_reduction <add>, %1, %cst [1] : vector<1x64x128xf32> to vector<1x128xf32>
    %3 = vector.shape_cast %2 : vector<1x128xf32> to vector<1x1x128xf32>
    %c32_i32 = arith.constant 32 : i32
    %4 = tpu.dynamic_rotate %3 by %c32_i32 dim 2 : vector<1x1x128xf32>, i32 -> vector<1x1x128xf32>
    %5 = arith.addf %3, %4 : vector<1x1x128xf32>
    %c64_i32 = arith.constant 64 : i32
    %6 = tpu.dynamic_rotate %3 by %c64_i32 dim 2 : vector<1x1x128xf32>, i32 -> vector<1x1x128xf32>
    %7 = arith.addf %5, %6 : vector<1x1x128xf32>
    %c96_i32 = arith.constant 96 : i32
    %8 = tpu.dynamic_rotate %3 by %c96_i32 dim 2 : vector<1x1x128xf32>, i32 -> vector<1x1x128xf32>
    %9 = arith.addf %7, %8 : vector<1x1x128xf32>
    %10 = math.sqrt %9 : vector<1x1x128xf32>
    %cst_2 = arith.constant dense<0.000000e+00> : vector<1x1xf32>
    %11 = vector.multi_reduction <add>, %10, %cst_2 [2] : vector<1x1x128xf32> to vector<1x1xf32>
    %12 = vector.shape_cast %11 : vector<1x1xf32> to vector<1x1x1xf32>
    %cst_3 = arith.constant 7.812500e-03 : f32
    %13 = vector.broadcast %cst_3 : f32 to vector<1x1x1xf32>
    %14 = arith.mulf %12, %13 : vector<1x1x1xf32>
    %cst_4 = arith.constant 9.99999997E-7 : f32
    %15 = vector.broadcast %cst_4 : f32 to vector<1x1x1xf32>
    %16 = arith.addf %14, %15 : vector<1x1x1xf32>
    %17 = vector.broadcast %16 : vector<1x1x1xf32> to vector<1x1x128xf32>
    %18 = arith.divf %10, %17 : vector<1x1x128xf32>
    %c0_5 = arith.constant 0 : index
    %c0_6 = arith.constant 0 : index
    %c0_7 = arith.constant 0 : index
    %19 = vector.load %arg2[%c0_5, %c0_6, %c0_7] : memref<1x1x128xf32, #tpu.memory_space<vmem>>, vector<1x1x128xf32>
    %20 = arith.mulf %19, %18 : vector<1x1x128xf32>
    %cst_8 = arith.constant 1.000000e+00 : f32
    %21 = vector.broadcast %cst_8 : f32 to vector<1x1x128xf32>
    %22 = arith.addf %20, %21 : vector<1x1x128xf32>
    %23 = vector.broadcast %22 : vector<1x1x128xf32> to vector<1x64x128xf32>
    %24 = arith.mulf %0, %23 : vector<1x64x128xf32>
    %c0_9 = arith.constant 0 : index
    %c0_10 = arith.constant 0 : index
    %c0_11 = arith.constant 0 : index
    %25 = vector.load %arg3[%c0_9, %c0_10, %c0_11] : memref<1x1x128xf32, #tpu.memory_space<vmem>>, vector<1x1x128xf32>
    %26 = vector.broadcast %25 : vector<1x1x128xf32> to vector<1x64x128xf32>
    %27 = arith.addf %24, %26 : vector<1x64x128xf32>
    %c0_12 = arith.constant 0 : index
    %c0_13 = arith.constant 0 : index
    %c0_14 = arith.constant 0 : index
    %28 = vector.load %arg4[%c0_12, %c0_13, %c0_14] : memref<1x64x128xf32, #tpu.memory_space<vmem>>, vector<1x64x128xf32>
    tpu.vector_store %arg4[%c0_12, %c0_13, %c0_14], %27 {strides = array<i32>} : memref<1x64x128xf32, #tpu.memory_space<vmem>>, vector<1x64x128xf32>,
    return
  }
  func.func @transform_0(%arg0: i32) -> (i32, i32, i32) {
    %c0_i32 = arith.constant 0 : i32
    %c0_i32_0 = arith.constant 0 : i32
    %c0_i32_1 = arith.constant 0 : i32
    return %arg0, %c0_i32, %c0_i32_0 : i32, i32, i32
  }
  func.func @transform_1(%arg0: i32) -> (i32, i32, i32) {
    %c0_i32 = arith.constant 0 : i32
    %c0_i32_0 = arith.constant 0 : i32
    %c0_i32_1 = arith.constant 0 : i32
    %c0_i32_2 = arith.constant 0 : i32
    return %c0_i32, %c0_i32_0, %c0_i32_1 : i32, i32, i32
  }
  func.func @transform_2(%arg0: i32) -> (i32, i32, i32) {
    %c0_i32 = arith.constant 0 : i32
    %c0_i32_0 = arith.constant 0 : i32
    %c0_i32_1 = arith.constant 0 : i32
    %c0_i32_2 = arith.constant 0 : i32
    return %c0_i32, %c0_i32_0, %c0_i32_1 : i32, i32, i32
  }
  func.func @transform_3(%arg0: i32) -> (i32, i32, i32) {
    %c0_i32 = arith.constant 0 : i32
    %c0_i32_0 = arith.constant 0 : i32
    %c0_i32_1 = arith.constant 0 : i32
    return %arg0, %c0_i32, %c0_i32_0 : i32, i32, i32
  }
}

</mosaic_0001>

<bundles_post_ra>
// kernel: tpu_custom_call.1
= control target key start
LH: loop header
LB: loop body
LE: loop exit
PB: predicated region body
PF: predicated region fallthrough
CT: control target
= control target key end

     0   :  { %8 = vsyncpa [#allocation3], 0  ;;  %s846_s0 = inlined_call_operand.hbm [shape: f32[2,64,128], index: 0, kind: input, shape index: {}]   ;;  %s847_s1 = inlined_call_operand.hbm [shape: f32[1,1,128], index: 1, kind: input, shape index: {}]   ;;  %s848_s2 = inlined_call_operand.vmem [shape: f32[1,1,128], index: 2, kind: input, shape index: {}]   ;;  %s849_s3 = inlined_call_operand.hbm [shape: f32[2,64,128], index: 3, kind: output, shape index: {}]  }
   0x1   :  { %10 = vsyncpa [#allocation3 + $0x1], 0 }
   0x2   :  { %11 = vsyncpa [#allocation6], 0 }
   0x3   :  { %12 = vsyncpa [#allocation4], 0 }
   0x4   :  { %14 = vsyncpa [#allocation4 + $0x1], 0  ;;  %s657_s12 = smov 0   ;;  %s659_s13 = smov 0  }
   0x5   :  { %s661_s14 = smov 0   ;;  %s663_s15 = smov 0  }
   0x6 LB: > { %s678_s16 = sadd.s32 4294967295, %s627_s15   ;;  %s410_s17 = sadd.s32 4294967294, %s627_s15   ;;  %s627_s15 = sphi %s663_s15, %s860_s15   ;;  %s623_s14 = sphi %s661_s14, %s859_s14   ;;  %s619_s13 = sphi %s659_s13, %s858_s13   ;;  %s615_s12 = sphi %s657_s12, %s857_s12  }
   0x7   : > { %s682_s18 = sadd.s32 1, %s627_s15   ;;  %s27_s19 = sadd.s32 1, %s623_s14 }
   0x8   : > { %s24_s20 = ssub.s32 %s627_s15, %s682_s18  ;;  %p34_p0 = scmp.ne.s32.totalorder %s623_s14, %s619_s13 }
   0x9   : > { %p25_p1 = scmp.eq.s32.totalorder %s24_s20, 0  ;;  %p35_p2 = scmp.eq.s32.totalorder %s627_s15, 0 }
   0xa   : > { %p40_p3 = scmp.ne.s32.totalorder %s619_s13, %s615_s12  ;;  %p41_p4 = scmp.eq.s32.totalorder %s678_s16, 0 }
   0xb   : > { %s694_s21 = scalar_select %p25_p1, %s623_s14, %s27_s19  }
   0xc   : > { %p696_p5 = por %p35_p2, %p34_p0  ;;  %p702_p6 = por %p41_p4, %p40_p3 }
   0xd   : > { %p106_p7 = scmp.eq.s32.totalorder %s678_s16, 1  ;;  %p112_p8 = scmp.eq.s32.totalorder %s410_s17, 1 }
   0xe   : > { %p411_p9 = scmp.ge.s32.totalorder %s627_s15, 1  ;;  %p119_p10 = scmp.lt.s32.totalorder %s627_s15, 3 }
   0xf   : > { %p709_p11 = por %p106_p7, %p34_p0  ;;  %p713_p12 = por %p112_p8, %p40_p3 }
  0x10   : > { %p717_p13 = pnand %p411_p9, %p119_p10  ;;  %s131_s29 = sshll.u32 %s847_s1, 4  ;;  %s132_s29 = int_to_ptr.hbm [resolvable:$true] %s131_s29 }
  0x11   : > { %s629_s30 = smov [#allocation5]   ;;  %p449_p3 = scmp.lt.s32.totalorder %s627_s15, 2 }
  0x12   : > { %p436_p1 = pneg %p717_p13  ;;  %s133_s4 = sshll.u32 %s629_s30, 4  ;;  %s134_s4 = int_to_ptr.vmem [resolvable:$true] %s133_s4 }
  0x13   : > { %s147_s5 = sand.u32 1, %s623_s14   ;;  %p733_p7 = pnand %p449_p3, %p696_p5 }
  0x14   : > { %p437_p2 = pnand %p436_p1, %p41_p4  ;;  %s414_s7 = sshll.u32 %s147_s5, 6 }
  0x15   : > { %s426_s8 = sshll.u32 %s627_s15, 6  ;;  %s151_s19 = scalar_lea.vmem [#allocation2], %s414_s7 }
  0x16   : > { %439 = dma.hbm_to_vmem [thread:$0]  (!%p437_p2), %s132_s29, 16, %s134_s4, [#allocation6]  }
  0x17   : > { %s156_s11 = scalar_lea.hbm %s846_s0, %s426_s8  ;;  %s159_s20 = sshll.u32 %s151_s19, 4  ;;  %s160_s20 = int_to_ptr.vmem [resolvable:$true] %s159_s20 }
  0x18   : > { %s157_s17 = sshll.u32 %s156_s11, 4  ;;  %s148_s27 = scalar_lea.sflag [#allocation3], %s147_s5  ;;  %s158_s17 = int_to_ptr.hbm [resolvable:$true] %s157_s17 }
  0x19   : > { %s527_s28 = sshra.s32 %s158_s17, 4  ;;  %p531_p8 = pneg %p733_p7  ;;  %s528_s28 = int_to_ptr.hbm [resolvable:$true] %s527_s28 }
  0x1a   : > { %s529_s22 = scalar_lea.hbm %s528_s28, 64  ;;  %s534_s4 = scalar_lea.hbm %s846_s0, 128 }
  0x1b   : > { %p530_p5 = scmp.ne.s32.totalorder %s528_s28, %s529_s22  ;;  %p535_p1 = scmp.lt.s32.totalorder %s528_s28, %s846_s0 }
  0x1c   : > { %p536_p2 = scmp.lt.s32.totalorder %s534_s4, %s529_s22 }
  0x1d   : > { %p532_p9 = pnand %p531_p8, %p530_p5 }
  0x1e   : > { %p537_p3 = por %p536_p2, %p535_p1 }
  0x1f   : > { %p533_p10 = pneg %p532_p9 }
  0x21   : > { %p538_p0 = pnand %p537_p3, %p533_p10 }
  0x23   : > { %541 = shalt.err (!%p538_p0)
}
  0x24   : > { %s630_s5 = smov 128   ;;  %s631_s7 = smov 8  }
  0x25   : > { %443 = dma.hbm_to_vmem [thread:$0]  (!%p733_p7), %s158_s17, 1024, %s160_s20, %s148_s27, %s630_s5, %s630_s5, %s631_s7  }
  0x26   : > { %171 = sbr.rel (%p717_p13) target bundleno = 384 (0x180), region = 32  ;;  %s754_s10 = sand.u32 (!%p717_p13), 1, %s619_s13  }
  0x27   : > { %s418_s11 = sshll.u32 (!%p717_p13), %s754_s10, 6  ;;  %s174_s19 = scalar_lea.sflag (!%p717_p13), [#allocation3], %s754_s10 }
  0x28   : > { %s177_s28 = scalar_lea.vmem (!%p717_p13), [#allocation2], %s418_s11 }
  0x2b   : > { %602 = dma.done.wait (%p702_p6), %s174_s19, 1024  }
  0x2c   : > { %604 = vsyncadd (%p702_p6), %s174_s19, 4294966272 }
  0x2d   : > { %606 = dma.done.wait (%p41_p4), [#allocation6], 16  }
  0x2e   : > { %608 = vsyncadd (%p41_p4), [#allocation6], 4294967280  ;;  %v768_v0 = vld [vmem:[%s177_s28] sm:$0xff]  ;;  %v770_v1 = vld [vmem:[%s177_s28 + $0x8] sm:$0xff]  ;;  %s632_s23 = smov 32   ;;  %s633_s26 = smov 96  }
  0x2f   : > { %v772_v2 = vld [vmem:[%s177_s28 + $0x10] sm:$0xff]  ;;  %v774_v3 = vld [vmem:[%s177_s28 + $0x18] sm:$0xff]  ;;  %v214_v4 = vmul.f32 %v768_v0, %v768_v0  ;;  %v215_v5 = vmul.f32 %v770_v1, %v770_v1  ;;  %v782_v7 = vld [vmem:[%s177_s28 + $0x20] sm:$0xff]  ;;  %s634_s6 = smov 64   ;;  %vm256_vm1 = vcmask 1040384   ;;  %s427_s27 = sshll.u32 %s678_s16, 6 }
  0x30   : > { %v216_v6 = vmul.f32 %v772_v2, %v772_v2  ;;  %v217_v8 = vmul.f32 %v774_v3, %v774_v3  ;;  %v786_v10 = vld [vmem:[%s177_s28 + $0x28] sm:$0xff]  ;;  %v218_v11 = vmul.f32 %v782_v7, %v782_v7  ;;  %v790_v13 = vld [vmem:[%s177_s28 + $0x30] sm:$0xff]  ;;  %v794_v16 = vld [vmem:[%s177_s28 + $0x38] sm:$0xff]  ;;  %s323_s16 = scalar_lea.hbm %s849_s3, %s427_s27  ;;  %s205_s30 = scalar_lea.vmem [#allocation7], %s418_s11 }
  0x31   : > { %v222_v9 = vadd.f32 %v215_v5, %v214_v4  ;;  %v219_v14 = vmul.f32 %v786_v10, %v786_v10  ;;  %v220_v17 = vmul.f32 %v790_v13, %v790_v13  ;;  %v221_v19 = vmul.f32 %v794_v16, %v794_v16  ;;  %v277_v58 = vld [vmem:[#allocation5] sm:$0x1]  ;;  %s324_s4 = sshll.u32 %s205_s30, 4  ;;  %s326_s9 = sshll.u32 %s323_s16, 4  ;;  %s325_s4 = int_to_ptr.vmem [resolvable:$true] %s324_s4  ;;  %s327_s9 = int_to_ptr.hbm [resolvable:$true] %s326_s9 }
  0x32   : > { %v492_v4 = vld [vmem:[%s848_s2] ss:$0 sm:$0xff]  ;;  %s312_s8 = scalar_lea.sflag [#allocation4], %s754_s10  ;;  %s571_s5 = sshra.s32 %s327_s9, 4  ;;  %s572_s5 = int_to_ptr.hbm [resolvable:$true] %s571_s5 }
  0x33   : > { %v223_v12 = vadd.f32 %v222_v9, %v216_v6  ;;  %s573_s7 = scalar_lea.hbm %s572_s5, 64  ;;  %s577_s28 = scalar_lea.hbm %s849_s3, 128 }
  0x34   : > { %p574_p4 = scmp.ne.s32.totalorder %s572_s5, %s573_s7  ;;  %p578_p0 = scmp.lt.s32.totalorder %s572_s5, %s849_s3 }
  0x35   : > { %v224_v15 = vadd.f32 %v223_v12, %v217_v8  ;;  %p579_p7 = scmp.lt.s32.totalorder %s577_s28, %s573_s7 }
  0x36   : > { %p575_p6 = pnand %p574_p4, %p709_p11 }
  0x37   : > { %v225_v18 = vadd.f32 %v224_v15, %v218_v11  ;;  %p580_p5 = por %p579_p7, %p578_p0 }
  0x38   : > { %p576_p13 = pneg %p575_p6 }
  0x39   : > { %v226_v20 = vadd.f32 %v225_v18, %v219_v14 }
  0x3a   : > { %p581_p8 = pnand %p580_p5, %p576_p13 }
  0x3b   : > { %v227_v21 = vadd.f32 %v226_v20, %v220_v17 }
  0x3d   : > { %v228_v22 = vadd.f32 %v227_v21, %v221_v19 }
  0x3f   : > { %v229_v23 = vrot.slane %v228_v22, 4 }
  0x41   : > { %v230_v24 = vadd.f32 %v229_v23, %v228_v22 }
  0x43   : > { %v231_v25 = vrot.slane %v230_v24, 2 }
  0x45   : > { %v232_v26 = vadd.f32 %v231_v25, %v230_v24 }
  0x47   : > { %v233_v27 = vrot.slane %v232_v26, 1 }
  0x49   : > { %v234_v28 = vadd.f32 %v233_v27, %v232_v26 }
  0x4b   : > { %235 = vrot.lane.b32.xlu0 %v234_v28, %s632_s23  ;;  %241 = vrot.lane.b32.xlu1 %v234_v28, %s633_s26 }
  0x53   : > { %238 = vrot.lane.b32.xlu0 %v234_v28, %s634_s6 }
  0xbd   : > { %v236_v29 = vpop.permute.xlu0 %235  ;;  %v242_v32 = vpop.permute.xlu1 %241 }
  0xbe   : > { %v237_v30 = vadd.f32 %v236_v29, %v234_v28 }
  0xc5   : > { %v239_v31 = vpop.permute.xlu0 %238 }
  0xc6   : > { %v240_v33 = vadd.f32 %v239_v31, %v237_v30 }
  0xc8   : > { %v243_v34 = vadd.f32 %v242_v32, %v240_v33 }
  0xca   : > { %493 = vrsqrt.f32 %v243_v34  ;;  %vm251_vm0 = vcmp.eq.f32.partialorder %v243_v34, inf  ;;  %v254_v42 = vand.u32 2147483648, %v243_v34  ;;  %vm253_vm2 = vcmp.eq.f32.partialorder %v243_v34, 0.0 }
  0xd0   : > { %v494_v35 = vpop.eup %493 }
  0xd1   : > { %v245_v36 = vmul.f32 %v494_v35, %v243_v34 }
  0xd3   : > { %v246_v37 = vmul.f32 %v494_v35, %v245_v36 }
  0xd5   : > { %v247_v38 = vmul.f32 0.5, %v246_v37 }
  0xd7   : > { %v248_v39 = vsub.f32 1.5, %v247_v38 }
  0xd9   : > { %v249_v40 = vmul.f32 %v494_v35, %v248_v39 }
  0xdb   : > { %v250_v41 = vmul.f32 %v249_v40, %v243_v34 }
  0xdd   : > { %v252_v43 = vsel %vm251_vm0, %v243_v34, %v250_v41 }
  0xde   : > { %v255_v44 = vsel %vm253_vm2, %v254_v42, %v252_v43 }
  0xdf   : > { %v257_v45 = vsel %vm256_vm1, %v255_v44, 0.0 }
  0xe0   : > { %258 = vadd.xlane.f32.xlu1 %v257_v45 }
 0x153   : > { %v259_v46 = vpop.xlane.xlu1 %258 }
 0x154   : > { %v260_v47 = vmul.f32 0.0078125, %v259_v46 }
 0x156   : > { %v261_v48 = vadd.f32 1e-06, %v260_v47 }
 0x158   : > { %495 = vrcp.f32 %v261_v48  ;;  %v273_v52 = vand.u32 2147483648, %v261_v48  ;;  %v271_v54 = vand.u32 2147483647, %v261_v48  ;;  %vm267_vm4 = vweird.f32 %v261_v48 }
 0x15a   : > { %v274_v56 = vor.u32 1.1754944e-38, %v273_v52  ;;  %vm272_vm6 = vcmp.eq.f32.partialorder %v271_v54, 8.507059e+37 }
 0x15e   : > { %v496_v49 = vpop.eup %495 }
 0x15f   : > { %v263_v50 = vmul.f32 %v496_v49, %v261_v48  ;;  %vm268_vm3 = vweird.f32 %v496_v49 }
 0x160   : > { %vm269_vm5 = vmor %vm267_vm4, %vm268_vm3 }
 0x161   : > { %v264_v51 = vsub.f32 1.0, %v263_v50 }
 0x163   : > { %v265_v53 = vmul.f32 %v496_v49, %v264_v51 }
 0x165   : > { %v266_v55 = vadd.f32 %v496_v49, %v265_v53 }
 0x167   : > { %v270_v57 = vsel %vm269_vm5, %v496_v49, %v266_v55 }
 0x168   : > { %v275_v59 = vsel %vm272_vm6, %v274_v56, %v270_v57 }
 0x169   : > { %v276_v60 = vmul.f32 %v275_v59, %v255_v44 }
 0x16b   : > { %v278_v61 = vmul.f32 %v277_v58, %v276_v60 }
 0x16d   : > { %v279_v62 = vadd.f32 1.0, %v278_v61 }
 0x16f   : > { %v281_v63 = vperm.slane %v279_v62, 0 }
 0x171   : > { %v283_v5 = vmul.f32 %v281_v63, %v768_v0  ;;  %v284_v6 = vmul.f32 %v281_v63, %v770_v1  ;;  %v285_v8 = vmul.f32 %v281_v63, %v772_v2  ;;  %v286_v9 = vmul.f32 %v281_v63, %v774_v3 }
 0x172   : > { %v287_v11 = vmul.f32 %v281_v63, %v782_v7  ;;  %v288_v12 = vmul.f32 %v281_v63, %v786_v10  ;;  %v289_v14 = vmul.f32 %v281_v63, %v790_v13  ;;  %v290_v0 = vmul.f32 %v281_v63, %v794_v16 }
 0x173   : > { %v295_v15 = vadd.f32 %v492_v4, %v283_v5  ;;  %v296_v17 = vadd.f32 %v492_v4, %v284_v6  ;;  %v297_v18 = vadd.f32 %v492_v4, %v285_v8  ;;  %v298_v1 = vadd.f32 %v492_v4, %v286_v9 }
 0x174   : > { %v299_v19 = vadd.f32 %v492_v4, %v287_v11  ;;  %v300_v2 = vadd.f32 %v492_v4, %v288_v12  ;;  %v301_v3 = vadd.f32 %v492_v4, %v289_v14  ;;  %v302_v7 = vadd.f32 %v492_v4, %v290_v0 }
 0x175   : > { %303 = vst [vmem:[%s205_s30] sm:$0xff] %v295_v15 }
 0x176   : > { %304 = vst [vmem:[%s205_s30 + $0x8] sm:$0xff] %v296_v17 }
 0x177   : > { %305 = vst [vmem:[%s205_s30 + $0x10] sm:$0xff] %v297_v18 }
 0x178   : > { %306 = vst [vmem:[%s205_s30 + $0x18] sm:$0xff] %v298_v1 }
 0x179   : > { %307 = vst [vmem:[%s205_s30 + $0x20] sm:$0xff] %v299_v19 }
 0x17a   : > { %308 = vst [vmem:[%s205_s30 + $0x28] sm:$0xff] %v300_v2 }
 0x17b   : > { %309 = vst [vmem:[%s205_s30 + $0x30] sm:$0xff] %v301_v3 }
 0x17c   : > { %310 = vst [vmem:[%s205_s30 + $0x38] sm:$0xff] %v302_v7 }
 0x17d   : > { %584 = shalt.err (!%p581_p8)
}
 0x17e   : > { %s635_s10 = smov 128   ;;  %s636_s6 = smov 8  }
 0x17f   : > { %434 = dma.vmem_to_hbm [thread:$0]  (%p709_p11), %s325_s4, 1024, %s327_s9, %s312_s8, %s635_s10, %s635_s10, %s636_s6  }
 0x180 PF: > { %s341_s17 = sand.u32 1, %s615_s12   ;;  %p856_p9 = scmp.ge.s32.totalorder %s627_s15, 2 }
 0x181   : > { %s342_s20 = scalar_lea.sflag [#allocation4], %s341_s17 }
 0x182   : > { %p445_p10 = pnand %p856_p9, %p713_p12 }
 0x184   : > { %p446_p1 = pneg %p445_p10 }
 0x186   : > { %610 = dma.done.wait (%p446_p1), %s342_s20, 1024  }
 0x187   : > { %612 = vsyncadd (%p446_p1), %s342_s20, 4294966272  ;;  %p17_p2 = scmp.ge.s32.totalorder %s682_s18, 4   ;;  %s857_s12 = smov %s619_s13 }
 0x188   : > { %s858_s13 = smov %s623_s14  ;;  %s859_s14 = smov %s694_s21 }
 0x189   : > { %s860_s15 = smov %s682_s18  ;;  %19 = sbr.rel (!%p17_p2) target bundleno = 6 (0x6), region = 81 }
 0x18e   :  { %348 = vsyncpa [#allocation3], 1 }
 0x18f   :  { %350 = vsyncpa [#allocation3 + $0x1], 1 }
 0x190   :  { %351 = vsyncpa [#allocation6], 1 }
 0x191   :  { %352 = vsyncpa [#allocation4], 1 }
 0x192   :  { %354 = vsyncpa [#allocation4 + $0x1], 1 }

</bundles_post_ra>
